<compile_context>
chip_gen: v7x
topology: tpu7x:2x2x1
jax: 0.10.0
libtpu: 0.0.40
codegen_flags: <defaults>
</compile_context>

<pallas_src>
import functools

import jax
import jax.numpy as jnp
from jax.experimental import pallas as pl
from jax.experimental.pallas import tpu as pltpu

DROPOUT_PROB = 0.1      # nn.Dropout is created in __init__ but never used in forward
NUMLABELS = 2
TEMPERATURE = 0.5
GUMBEL_EPS = 1e-20


# ---------------------------------------------------------------------------
# Kernel: poisoned-input construction (get_poisoned_input hot path)
#
# Block layouts (lane axis = last dim, chosen dense everywhere):
#   sent_ref    [Bt, Lt, E]        bf16/f32
#   cand_ref    [C, Bt, Lt, E]     bf16/f32  (candidate-major: cand_ref[c] is a
#                                             dense (Bt, Lt, E) tile)
#   relmat_ref  [Lt, E]            f32
#   bias_t_ref  [C, Lt]            f32       (relevance_bias transposed)
#   u_t_ref     [Bt, C, Lt]        f32       (uniform noise, transposed)
# outputs:
#   out_ref     [Bt, Lt, E]        f32       poisoned embeddings
#   sm_t_ref    [Bt, C, Lt]        f32       softmax weights, lane-dense stores
# ---------------------------------------------------------------------------
def _poison_kernel(sent_ref, cand_ref, relmat_ref, bias_t_ref, u_t_ref,
                   out_ref, sm_t_ref, *, inv_temperature, num_candidates):
    f32 = jnp.float32
    sent = sent_ref[...].astype(f32)                       # [Bt, Lt, E]
    relmat = relmat_ref[...]                               # [Lt, E]
    bias_t = bias_t_ref[...]                               # [C, Lt]
    u_t = u_t_ref[...]                                     # [Bt, C, Lt]

    # Hoisted once (JAX does not CSE broadcast_in_dim inside the unrolled loop).
    relmat_b = jnp.broadcast_to(relmat[None, :, :], sent.shape)   # [Bt, Lt, E]

    # Sentence term of the score, computed once per (b, l) row.  Together with
    # the per-candidate term below this replaces the reference's
    # `difference = candidates - repeated(sentence)` so no [*, C, E] broadcast
    # temporary is ever materialized.
    sent_score = jnp.sum(sent * relmat_b, axis=-1)         # [Bt, Lt]

    # --- pass 1 (unrolled over C; C is small and static): gumbel logits ------
    logits = []
    for c in range(num_candidates):
        cand_c = cand_ref[c].astype(f32)                   # [Bt, Lt, E]
        score_c = jnp.sum(cand_c * relmat_b, axis=-1)      # [Bt, Lt]
        gumbel_c = -jnp.log(-jnp.log(u_t[:, c, :] + GUMBEL_EPS) + GUMBEL_EPS)
        # (score + bias + gumbel) / T, with 1/T folded into a single multiply.
        logits.append((score_c - sent_score + bias_t[c:c + 1, :] + gumbel_c)
                      * inv_temperature)

    # --- numerically-stable softmax over the unrolled candidate axis ---------
    # Everything stays [Bt, Lt] (L on lanes); no C-last masked reductions.
    m = logits[0]
    for c in range(1, num_candidates):
        m = jnp.maximum(m, logits[c])
    exps = [jnp.exp(x - m) for x in logits]
    denom = exps[0]
    for c in range(1, num_candidates):
        denom = denom + exps[c]
    inv_denom = pl.reciprocal(denom, approx=True)          # EUP slot, no VPU divide

    # --- pass 2 (unrolled over C): weighted candidate sum --------------------
    # Single [Bt, Lt, E] f32 accumulator; candidate tiles are re-read from VMEM
    # per c instead of keeping a second [*, C, E] (sm * cand) temporary live.
    acc = None
    for c in range(num_candidates):
        w_c = exps[c] * inv_denom                          # [Bt, Lt]
        sm_t_ref[:, pl.ds(c, 1), :] = w_c[:, None, :]      # lane-dense store
        term = w_c[:, :, None] * cand_ref[c].astype(f32)   # [Bt, Lt, E]
        acc = term if acc is None else acc + term
    out_ref[...] = acc.astype(out_ref.dtype)


def get_poisoned_input(sentence, candidates, relevance_mat, relevance_bias,
                       u_noise, temperature=TEMPERATURE,
                       block_l=None, block_b=None):
    """sentence [B,L,E]; candidates [C,B,L,E] (candidate-major);
    relevance_mat [L,E]; relevance_bias [L,C]; u_noise [B,L,C] in U(0,1).

    Returns (poisoned_input [B,L,E] f32, probabilities_sm [B*L, C] f32)."""
    B, L, E = sentence.shape
    C = candidates.shape[0]

    # ---- tile selection -----------------------------------------------------
    if block_l is None:
        block_l = L if L <= 128 else 128      # BERT L=128/512 divides evenly
    assert L % block_l == 0, (L, block_l)
    if block_b is None:
        # Pack several batch rows per grid step while the candidate block stays
        # small, so per-step work dwarfs the ~0.35us grid-step overhead at toy
        # sizes; at BERT scale this naturally stays at 1.
        cand_row_bytes = block_l * C * E * candidates.dtype.itemsize
        block_b = 1
        while (block_b < B and B % (2 * block_b) == 0
               and 2 * block_b * cand_row_bytes <= 2 * 1024 * 1024):
            block_b *= 2
    assert B % block_b == 0, (B, block_b)
    grid = (B // block_b, L // block_l)

    # Lane-dense layouts for the small per-(l, c) tensors: L on the lane axis.
    bias_t = relevance_bias.T.astype(jnp.float32)             # [C, L]
    u_t = jnp.swapaxes(u_noise, 1, 2).astype(jnp.float32)     # [B, C, L]

    # Scoped-VMEM limit: raise v5e's 16 MiB default when large L/E tiles are
    # used; stay well under v7x's 64 MiB physical VMEM.
    per_step_bytes = (
        block_b * C * block_l * E * candidates.dtype.itemsize
        + block_b * block_l * E * sentence.dtype.itemsize
        + block_b * block_l * E * 4                              # poisoned out
        + (block_l * E + C * block_l + 2 * block_b * C * block_l) * 4)
    vmem_limit = int(min(48 * 1024 * 1024,
                         max(32 * 1024 * 1024, 3 * per_step_bytes)))

    kernel = functools.partial(_poison_kernel,
                               inv_temperature=float(1.0 / temperature),
                               num_candidates=C)

    poisoned, sm_t = pl.pallas_call(
        kernel,
        grid=grid,
        in_specs=[
            pl.BlockSpec((block_b, block_l, E), lambda bi, li: (bi, li, 0)),
            pl.BlockSpec((C, block_b, block_l, E), lambda bi, li: (0, bi, li, 0)),
            pl.BlockSpec((block_l, E), lambda bi, li: (li, 0)),
            pl.BlockSpec((C, block_l), lambda bi, li: (0, li)),
            pl.BlockSpec((block_b, C, block_l), lambda bi, li: (bi, 0, li)),
        ],
        out_specs=[
            pl.BlockSpec((block_b, block_l, E), lambda bi, li: (bi, li, 0)),
            pl.BlockSpec((block_b, C, block_l), lambda bi, li: (bi, 0, li)),
        ],
        out_shape=[
            jax.ShapeDtypeStruct((B, L, E), jnp.float32),
            jax.ShapeDtypeStruct((B, C, L), jnp.float32),
        ],
        compiler_params=pltpu.CompilerParams(
            dimension_semantics=("parallel", "parallel"),
            vmem_limit_bytes=vmem_limit),
    )(sentence, candidates, relevance_mat.astype(jnp.float32), bias_t, u_t)

    # matches probabilities_sm.view(-1, MAX_CANDIDATES) of the reference module
    probs_sm = jnp.swapaxes(sm_t, 1, 2).reshape(B * L, C)
    return poisoned, probs_sm


# ---------------------------------------------------------------------------
# Module forward (embedding gathers / concat / tiny classifier stay in JAX)
# ---------------------------------------------------------------------------
def forward(params, seq_ids, to_poison_candidates_ids, attn_masks, u_noise,
            gumbel_hard=False, compute_dtype=jnp.bfloat16):
    to_poison_ids, no_poison_ids = seq_ids
    to_poison_attn_masks, no_poison_attn_masks = attn_masks

    pos = params["pos_emb"]                                          # [L, E]
    to_poison = params["word_emb"][to_poison_ids] + pos[None]        # [B, L, E]
    no_poison = params["word_emb"][no_poison_ids] + pos[None]        # [B, L, E]
    # Gather candidates directly in candidate-major [C, B, L, E] layout so the
    # kernel streams dense (L, E) tiles per candidate (no big-tensor transpose,
    # no C->8 sublane padding inside the kernel).
    cand_ids_cmajor = jnp.transpose(to_poison_candidates_ids, (2, 0, 1))  # [C,B,L]
    to_poison_candidates = (params["word_emb"][cand_ids_cmajor]
                            + pos[None, None, :, :])                 # [C, B, L, E]

    # The poison path is memory-bound on the candidate tensor: DMA it (and the
    # sentence) as bf16 and accumulate in f32 inside the kernel.
    poisoned_input, _probs_sm = get_poisoned_input(
        to_poison.astype(compute_dtype),
        to_poison_candidates.astype(compute_dtype),
        params["relevance_mat"], params["relevance_bias"], u_noise)

    # TODO(synk): gumbelHard straight-through path and push_stats /
    # tokenizer.decode logging are host-side bookkeeping with no Pallas
    # equivalent; only the soft (hard=False) gumbel-softmax path is implemented.
    total_input = jnp.concatenate([poisoned_input, no_poison], axis=0)
    total_attn_mask = jnp.concatenate(
        [to_poison_attn_masks, no_poison_attn_masks], axis=0)
    del total_attn_mask  # only consumed by the external BERT model (see below)

    # TODO(synk): nextBertModel is an external pretrained BERT passed into
    # __init__ (not defined by this module); stood in here by identity on
    # inputs_embeds, so last_hidden_state == total_input.
    last_hidden_state = total_input

    # Classifier head: a [2B, E] x [E, 2] matmul sits far below pallas_call /
    # MXU granularity (2 output lanes of 128+), so per perf review it is left
    # to XLA instead of a dedicated kernel.
    logits = last_hidden_state[:, 0, :] @ params["cls_w"].T + params["cls_b"]
    return logits


# ---------------------------------------------------------------------------
# Pure-JAX reference (for in-script verification)
# ---------------------------------------------------------------------------
def reference_forward(params, seq_ids, cand_ids, u_noise,
                      compute_dtype=jnp.bfloat16):
    to_poison_ids, no_poison_ids = seq_ids
    f32 = jnp.float32
    pos = params["pos_emb"]
    to_poison = ((params["word_emb"][to_poison_ids] + pos[None])
                 .astype(compute_dtype).astype(f32))
    no_poison = params["word_emb"][no_poison_ids] + pos[None]
    cand = ((params["word_emb"][cand_ids] + pos[None, :, None, :])
            .astype(compute_dtype).astype(f32))               # [B, L, C, E]

    diff = cand - to_poison[:, :, None, :]
    scores = jnp.einsum("blce,le->blc", diff, params["relevance_mat"])
    probs = scores + params["relevance_bias"][None]
    g = -jnp.log(-jnp.log(u_noise + GUMBEL_EPS) + GUMBEL_EPS)
    sm = jax.nn.softmax((probs + g) / TEMPERATURE, axis=-1)
    poisoned = jnp.einsum("blc,blce->ble", sm, cand)

    total = jnp.concatenate([poisoned, no_poison], axis=0)
    return total[:, 0, :] @ params["cls_w"].T + params["cls_b"]


# ---------------------------------------------------------------------------
if __name__ == "__main__":
    key = jax.random.PRNGKey(0)
    B, L, C, E = 2, 8, 5, 32      # N_BATCH, N_LENGTH, N_CANDIDATES, N_EMBSIZE (small)
    VOCAB = 256

    keys = jax.random.split(key, 10)
    params = {
        "word_emb": 0.02 * jax.random.normal(keys[0], (VOCAB, E), jnp.float32),
        "pos_emb": 0.02 * jax.random.normal(keys[1], (L, E), jnp.float32),
        # module __init__ uses zeros; small deterministic values used here so
        # the score path is actually exercised.
        "relevance_mat": 0.1 * jax.random.normal(keys[2], (L, E), jnp.float32),
        "relevance_bias": 0.1 * jax.random.normal(keys[3], (L, C), jnp.float32),
        "cls_w": 0.1 * jax.random.normal(keys[4], (NUMLABELS, E), jnp.float32),
        "cls_b": jnp.zeros((NUMLABELS,), jnp.float32),
    }

    to_poison_ids = jax.random.randint(keys[5], (B, L), 0, VOCAB)
    no_poison_ids = jax.random.randint(keys[6], (B, L), 0, VOCAB)
    cand_ids = jax.random.randint(keys[7], (B, L, C), 0, VOCAB)
    to_poison_attn = jnp.ones((B, L), jnp.int32)
    no_poison_attn = jnp.ones((B, L), jnp.int32)
    # uniform noise feeding sample_gumbel (torch.rand equivalent), fixed seed
    u_noise = jax.random.uniform(keys[8], (B, L, C), jnp.float32)

    logits = forward(params,
                     (to_poison_ids, no_poison_ids),
                     cand_ids,
                     (to_poison_attn, no_poison_attn),
                     u_noise)
    logits = jax.block_until_ready(logits)

    ref = reference_forward(params, (to_poison_ids, no_poison_ids), cand_ids,
                            u_noise)
    assert logits.shape == (2 * B, NUMLABELS)
    # tolerance covers bf16-input rounding + approx reciprocal in the kernel
    assert jnp.allclose(logits, ref, rtol=2e-2, atol=1e-3), (logits, ref)

    print("KERNEL_OK")
</pallas_src>

<mosaic_0001>
module attributes {stable_mosaic.version = 11 : i64} {
  func.func @_poison_kernel(%arg0: i32, %arg1: i32, %arg2: memref<2x8x32xbf16, #tpu.memory_space<vmem>>, %arg3: memref<5x2x8x32xbf16, #tpu.memory_space<vmem>>, %arg4: memref<8x32xf32, #tpu.memory_space<vmem>>, %arg5: memref<5x8xf32, #tpu.memory_space<vmem>>, %arg6: memref<2x5x8xf32, #tpu.memory_space<vmem>>, %arg7: memref<2x8x32xf32, #tpu.memory_space<vmem>>, %arg8: memref<2x5x8xf32, #tpu.memory_space<vmem>>) attributes {dimension_semantics = [#tpu.dimension_semantics<parallel>, #tpu.dimension_semantics<parallel>], iteration_bounds = array<i64: 1, 1>, scalar_prefetch = 0 : i64, scratch_operands = 0 : i64, tpu.core_type = #tpu.core_type<tc>, window_params = [{transform_indices = @transform_0, window_bounds = array<i64: 2, 8, 32>}, {transform_indices = @transform_1, window_bounds = array<i64: 5, 2, 8, 32>}, {transform_indices = @transform_2, window_bounds = array<i64: 8, 32>}, {transform_indices = @transform_3, window_bounds = array<i64: 5, 8>}, {transform_indices = @transform_4, window_bounds = array<i64: 2, 5, 8>}, {transform_indices = @transform_5, window_bounds = array<i64: 2, 8, 32>}, {transform_indices = @transform_6, window_bounds = array<i64: 2, 5, 8>}]} {
    %c0 = arith.constant 0 : index
    %c0_0 = arith.constant 0 : index
    %c0_1 = arith.constant 0 : index
    %0 = vector.load %arg2[%c0, %c0_0, %c0_1] : memref<2x8x32xbf16, #tpu.memory_space<vmem>>, vector<2x8x32xbf16>
    %1 = arith.extf %0 : vector<2x8x32xbf16> to vector<2x8x32xf32>
    %c0_2 = arith.constant 0 : index
    %c0_3 = arith.constant 0 : index
    %2 = vector.load %arg4[%c0_2, %c0_3] : memref<8x32xf32, #tpu.memory_space<vmem>>, vector<8x32xf32>
    %c0_4 = arith.constant 0 : index
    %c0_5 = arith.constant 0 : index
    %3 = vector.load %arg5[%c0_4, %c0_5] : memref<5x8xf32, #tpu.memory_space<vmem>>, vector<5x8xf32>
    %c0_6 = arith.constant 0 : index
    %c0_7 = arith.constant 0 : index
    %c0_8 = arith.constant 0 : index
    %4 = vector.load %arg6[%c0_6, %c0_7, %c0_8] : memref<2x5x8xf32, #tpu.memory_space<vmem>>, vector<2x5x8xf32>
    %5 = vector.shape_cast %2 : vector<8x32xf32> to vector<1x8x32xf32>
    %6 = vector.shape_cast %5 : vector<1x8x32xf32> to vector<1x8x32xf32>
    %7 = vector.broadcast %6 : vector<1x8x32xf32> to vector<2x8x32xf32>
    %8 = arith.mulf %1, %7 : vector<2x8x32xf32>
    %cst = arith.constant dense<0.000000e+00> : vector<2x8xf32>
    %9 = vector.multi_reduction <add>, %8, %cst [2] : vector<2x8x32xf32> to vector<2x8xf32>
    %c0_9 = arith.constant 0 : index
    %c0_10 = arith.constant 0 : index
    %c0_11 = arith.constant 0 : index
    %c0_12 = arith.constant 0 : index
    %10 = vector.load %arg3[%c0_9, %c0_10, %c0_11, %c0_12] : memref<5x2x8x32xbf16, #tpu.memory_space<vmem>>, vector<1x2x8x32xbf16>
    %11 = vector.shape_cast %10 : vector<1x2x8x32xbf16> to vector<2x8x32xbf16>
    %12 = arith.extf %11 : vector<2x8x32xbf16> to vector<2x8x32xf32>
    %13 = arith.mulf %12, %7 : vector<2x8x32xf32>
    %cst_13 = arith.constant dense<0.000000e+00> : vector<2x8xf32>
    %14 = vector.multi_reduction <add>, %13, %cst_13 [2] : vector<2x8x32xf32> to vector<2x8xf32>
    %15 = vector.extract_strided_slice %4 {offsets = [0, 0, 0], sizes = [2, 1, 8], strides = [1, 1, 1]} : vector<2x5x8xf32> to vector<2x1x8xf32>
    %16 = vector.shape_cast %15 : vector<2x1x8xf32> to vector<2x8xf32>
    %cst_14 = arith.constant 9.99999968E-21 : f32
    %17 = vector.broadcast %cst_14 : f32 to vector<2x8xf32>
    %18 = arith.addf %16, %17 : vector<2x8xf32>
    %19 = math.log %18 : vector<2x8xf32>
    %cst_15 = arith.constant 0.000000e+00 : f32
    %20 = vector.broadcast %cst_15 : f32 to vector<2x8xf32>
    %21 = arith.subf %20, %19 : vector<2x8xf32>
    %cst_16 = arith.constant 9.99999968E-21 : f32
    %22 = vector.broadcast %cst_16 : f32 to vector<2x8xf32>
    %23 = arith.addf %21, %22 : vector<2x8xf32>
    %24 = math.log %23 : vector<2x8xf32>
    %cst_17 = arith.constant 0.000000e+00 : f32
    %25 = vector.broadcast %cst_17 : f32 to vector<2x8xf32>
    %26 = arith.subf %25, %24 : vector<2x8xf32>
    %27 = arith.subf %14, %9 : vector<2x8xf32>
    %28 = vector.extract_strided_slice %3 {offsets = [0, 0], sizes = [1, 8], strides = [1, 1]} : vector<5x8xf32> to vector<1x8xf32>
    %29 = vector.broadcast %28 : vector<1x8xf32> to vector<2x8xf32>
    %30 = arith.addf %27, %29 : vector<2x8xf32>
    %31 = arith.addf %30, %26 : vector<2x8xf32>
    %cst_18 = arith.constant 2.000000e+00 : f32
    %32 = vector.broadcast %cst_18 : f32 to vector<2x8xf32>
    %33 = arith.mulf %31, %32 : vector<2x8xf32>
    %c1 = arith.constant 1 : index
    %c0_19 = arith.constant 0 : index
    %c0_20 = arith.constant 0 : index
    %c0_21 = arith.constant 0 : index
    %34 = vector.load %arg3[%c1, %c0_19, %c0_20, %c0_21] : memref<5x2x8x32xbf16, #tpu.memory_space<vmem>>, vector<1x2x8x32xbf16>
    %35 = vector.shape_cast %34 : vector<1x2x8x32xbf16> to vector<2x8x32xbf16>
    %36 = arith.extf %35 : vector<2x8x32xbf16> to vector<2x8x32xf32>
    %37 = arith.mulf %36, %7 : vector<2x8x32xf32>
    %cst_22 = arith.constant dense<0.000000e+00> : vector<2x8xf32>
    %38 = vector.multi_reduction <add>, %37, %cst_22 [2] : vector<2x8x32xf32> to vector<2x8xf32>
    %39 = vector.extract_strided_slice %4 {offsets = [0, 1, 0], sizes = [2, 1, 8], strides = [1, 1, 1]} : vector<2x5x8xf32> to vector<2x1x8xf32>
    %40 = vector.shape_cast %39 : vector<2x1x8xf32> to vector<2x8xf32>
    %cst_23 = arith.constant 9.99999968E-21 : f32
    %41 = vector.broadcast %cst_23 : f32 to vector<2x8xf32>
    %42 = arith.addf %40, %41 : vector<2x8xf32>
    %43 = math.log %42 : vector<2x8xf32>
    %cst_24 = arith.constant 0.000000e+00 : f32
    %44 = vector.broadcast %cst_24 : f32 to vector<2x8xf32>
    %45 = arith.subf %44, %43 : vector<2x8xf32>
    %cst_25 = arith.constant 9.99999968E-21 : f32
    %46 = vector.broadcast %cst_25 : f32 to vector<2x8xf32>
    %47 = arith.addf %45, %46 : vector<2x8xf32>
    %48 = math.log %47 : vector<2x8xf32>
    %cst_26 = arith.constant 0.000000e+00 : f32
    %49 = vector.broadcast %cst_26 : f32 to vector<2x8xf32>
    %50 = arith.subf %49, %48 : vector<2x8xf32>
    %51 = arith.subf %38, %9 : vector<2x8xf32>
    %52 = vector.extract_strided_slice %3 {offsets = [1, 0], sizes = [1, 8], strides = [1, 1]} : vector<5x8xf32> to vector<1x8xf32>
    %53 = vector.broadcast %52 : vector<1x8xf32> to vector<2x8xf32>
    %54 = arith.addf %51, %53 : vector<2x8xf32>
    %55 = arith.addf %54, %50 : vector<2x8xf32>
    %cst_27 = arith.constant 2.000000e+00 : f32
    %56 = vector.broadcast %cst_27 : f32 to vector<2x8xf32>
    %57 = arith.mulf %55, %56 : vector<2x8xf32>
    %c2 = arith.constant 2 : index
    %c0_28 = arith.constant 0 : index
    %c0_29 = arith.constant 0 : index
    %c0_30 = arith.constant 0 : index
    %58 = vector.load %arg3[%c2, %c0_28, %c0_29, %c0_30] : memref<5x2x8x32xbf16, #tpu.memory_space<vmem>>, vector<1x2x8x32xbf16>
    %59 = vector.shape_cast %58 : vector<1x2x8x32xbf16> to vector<2x8x32xbf16>
    %60 = arith.extf %59 : vector<2x8x32xbf16> to vector<2x8x32xf32>
    %61 = arith.mulf %60, %7 : vector<2x8x32xf32>
    %cst_31 = arith.constant dense<0.000000e+00> : vector<2x8xf32>
    %62 = vector.multi_reduction <add>, %61, %cst_31 [2] : vector<2x8x32xf32> to vector<2x8xf32>
    %63 = vector.extract_strided_slice %4 {offsets = [0, 2, 0], sizes = [2, 1, 8], strides = [1, 1, 1]} : vector<2x5x8xf32> to vector<2x1x8xf32>
    %64 = vector.shape_cast %63 : vector<2x1x8xf32> to vector<2x8xf32>
    %cst_32 = arith.constant 9.99999968E-21 : f32
    %65 = vector.broadcast %cst_32 : f32 to vector<2x8xf32>
    %66 = arith.addf %64, %65 : vector<2x8xf32>
    %67 = math.log %66 : vector<2x8xf32>
    %cst_33 = arith.constant 0.000000e+00 : f32
    %68 = vector.broadcast %cst_33 : f32 to vector<2x8xf32>
    %69 = arith.subf %68, %67 : vector<2x8xf32>
    %cst_34 = arith.constant 9.99999968E-21 : f32
    %70 = vector.broadcast %cst_34 : f32 to vector<2x8xf32>
    %71 = arith.addf %69, %70 : vector<2x8xf32>
    %72 = math.log %71 : vector<2x8xf32>
    %cst_35 = arith.constant 0.000000e+00 : f32
    %73 = vector.broadcast %cst_35 : f32 to vector<2x8xf32>
    %74 = arith.subf %73, %72 : vector<2x8xf32>
    %75 = arith.subf %62, %9 : vector<2x8xf32>
    %76 = vector.extract_strided_slice %3 {offsets = [2, 0], sizes = [1, 8], strides = [1, 1]} : vector<5x8xf32> to vector<1x8xf32>
    %77 = vector.broadcast %76 : vector<1x8xf32> to vector<2x8xf32>
    %78 = arith.addf %75, %77 : vector<2x8xf32>
    %79 = arith.addf %78, %74 : vector<2x8xf32>
    %cst_36 = arith.constant 2.000000e+00 : f32
    %80 = vector.broadcast %cst_36 : f32 to vector<2x8xf32>
    %81 = arith.mulf %79, %80 : vector<2x8xf32>
    %c3 = arith.constant 3 : index
    %c0_37 = arith.constant 0 : index
    %c0_38 = arith.constant 0 : index
    %c0_39 = arith.constant 0 : index
    %82 = vector.load %arg3[%c3, %c0_37, %c0_38, %c0_39] : memref<5x2x8x32xbf16, #tpu.memory_space<vmem>>, vector<1x2x8x32xbf16>
    %83 = vector.shape_cast %82 : vector<1x2x8x32xbf16> to vector<2x8x32xbf16>
    %84 = arith.extf %83 : vector<2x8x32xbf16> to vector<2x8x32xf32>
    %85 = arith.mulf %84, %7 : vector<2x8x32xf32>
    %cst_40 = arith.constant dense<0.000000e+00> : vector<2x8xf32>
    %86 = vector.multi_reduction <add>, %85, %cst_40 [2] : vector<2x8x32xf32> to vector<2x8xf32>
    %87 = vector.extract_strided_slice %4 {offsets = [0, 3, 0], sizes = [2, 1, 8], strides = [1, 1, 1]} : vector<2x5x8xf32> to vector<2x1x8xf32>
    %88 = vector.shape_cast %87 : vector<2x1x8xf32> to vector<2x8xf32>
    %cst_41 = arith.constant 9.99999968E-21 : f32
    %89 = vector.broadcast %cst_41 : f32 to vector<2x8xf32>
    %90 = arith.addf %88, %89 : vector<2x8xf32>
    %91 = math.log %90 : vector<2x8xf32>
    %cst_42 = arith.constant 0.000000e+00 : f32
    %92 = vector.broadcast %cst_42 : f32 to vector<2x8xf32>
    %93 = arith.subf %92, %91 : vector<2x8xf32>
    %cst_43 = arith.constant 9.99999968E-21 : f32
    %94 = vector.broadcast %cst_43 : f32 to vector<2x8xf32>
    %95 = arith.addf %93, %94 : vector<2x8xf32>
    %96 = math.log %95 : vector<2x8xf32>
    %cst_44 = arith.constant 0.000000e+00 : f32
    %97 = vector.broadcast %cst_44 : f32 to vector<2x8xf32>
    %98 = arith.subf %97, %96 : vector<2x8xf32>
    %99 = arith.subf %86, %9 : vector<2x8xf32>
    %100 = vector.extract_strided_slice %3 {offsets = [3, 0], sizes = [1, 8], strides = [1, 1]} : vector<5x8xf32> to vector<1x8xf32>
    %101 = vector.broadcast %100 : vector<1x8xf32> to vector<2x8xf32>
    %102 = arith.addf %99, %101 : vector<2x8xf32>
    %103 = arith.addf %102, %98 : vector<2x8xf32>
    %cst_45 = arith.constant 2.000000e+00 : f32
    %104 = vector.broadcast %cst_45 : f32 to vector<2x8xf32>
    %105 = arith.mulf %103, %104 : vector<2x8xf32>
    %c4 = arith.constant 4 : index
    %c0_46 = arith.constant 0 : index
    %c0_47 = arith.constant 0 : index
    %c0_48 = arith.constant 0 : index
    %106 = vector.load %arg3[%c4, %c0_46, %c0_47, %c0_48] : memref<5x2x8x32xbf16, #tpu.memory_space<vmem>>, vector<1x2x8x32xbf16>
    %107 = vector.shape_cast %106 : vector<1x2x8x32xbf16> to vector<2x8x32xbf16>
    %108 = arith.extf %107 : vector<2x8x32xbf16> to vector<2x8x32xf32>
    %109 = arith.mulf %108, %7 : vector<2x8x32xf32>
    %cst_49 = arith.constant dense<0.000000e+00> : vector<2x8xf32>
    %110 = vector.multi_reduction <add>, %109, %cst_49 [2] : vector<2x8x32xf32> to vector<2x8xf32>
    %111 = vector.extract_strided_slice %4 {offsets = [0, 4, 0], sizes = [2, 1, 8], strides = [1, 1, 1]} : vector<2x5x8xf32> to vector<2x1x8xf32>
    %112 = vector.shape_cast %111 : vector<2x1x8xf32> to vector<2x8xf32>
    %cst_50 = arith.constant 9.99999968E-21 : f32
    %113 = vector.broadcast %cst_50 : f32 to vector<2x8xf32>
    %114 = arith.addf %112, %113 : vector<2x8xf32>
    %115 = math.log %114 : vector<2x8xf32>
    %cst_51 = arith.constant 0.000000e+00 : f32
    %116 = vector.broadcast %cst_51 : f32 to vector<2x8xf32>
    %117 = arith.subf %116, %115 : vector<2x8xf32>
    %cst_52 = arith.constant 9.99999968E-21 : f32
    %118 = vector.broadcast %cst_52 : f32 to vector<2x8xf32>
    %119 = arith.addf %117, %118 : vector<2x8xf32>
    %120 = math.log %119 : vector<2x8xf32>
    %cst_53 = arith.constant 0.000000e+00 : f32
    %121 = vector.broadcast %cst_53 : f32 to vector<2x8xf32>
    %122 = arith.subf %121, %120 : vector<2x8xf32>
    %123 = arith.subf %110, %9 : vector<2x8xf32>
    %124 = vector.extract_strided_slice %3 {offsets = [4, 0], sizes = [1, 8], strides = [1, 1]} : vector<5x8xf32> to vector<1x8xf32>
    %125 = vector.broadcast %124 : vector<1x8xf32> to vector<2x8xf32>
    %126 = arith.addf %123, %125 : vector<2x8xf32>
    %127 = arith.addf %126, %122 : vector<2x8xf32>
    %cst_54 = arith.constant 2.000000e+00 : f32
    %128 = vector.broadcast %cst_54 : f32 to vector<2x8xf32>
    %129 = arith.mulf %127, %128 : vector<2x8xf32>
    %130 = arith.maximumf %33, %57 : vector<2x8xf32>
    %131 = arith.maximumf %130, %81 : vector<2x8xf32>
    %132 = arith.maximumf %131, %105 : vector<2x8xf32>
    %133 = arith.maximumf %132, %129 : vector<2x8xf32>
    %134 = arith.subf %33, %133 : vector<2x8xf32>
    %135 = math.exp %134 : vector<2x8xf32>
    %136 = arith.subf %57, %133 : vector<2x8xf32>
    %137 = math.exp %136 : vector<2x8xf32>
    %138 = arith.subf %81, %133 : vector<2x8xf32>
    %139 = math.exp %138 : vector<2x8xf32>
    %140 = arith.subf %105, %133 : vector<2x8xf32>
    %141 = math.exp %140 : vector<2x8xf32>
    %142 = arith.subf %129, %133 : vector<2x8xf32>
    %143 = math.exp %142 : vector<2x8xf32>
    %144 = arith.addf %135, %137 : vector<2x8xf32>
    %145 = arith.addf %144, %139 : vector<2x8xf32>
    %146 = arith.addf %145, %141 : vector<2x8xf32>
    %147 = arith.addf %146, %143 : vector<2x8xf32>
    %148 = tpu.reciprocal %147 {approx = true} : vector<2x8xf32> -> vector<2x8xf32>
    %149 = arith.mulf %135, %148 : vector<2x8xf32>
    %150 = vector.shape_cast %149 : vector<2x8xf32> to vector<2x1x8xf32>
    %c0_55 = arith.constant 0 : index
    %c0_56 = arith.constant 0 : index
    %c0_57 = arith.constant 0 : index
    %151 = vector.load %arg8[%c0_55, %c0_56, %c0_57] : memref<2x5x8xf32, #tpu.memory_space<vmem>>, vector<2x1x8xf32>
    tpu.vector_store %arg8[%c0_55, %c0_56, %c0_57], %150 {strides = array<i32>} : memref<2x5x8xf32, #tpu.memory_space<vmem>>, vector<2x1x8xf32>,
    %152 = vector.shape_cast %149 : vector<2x8xf32> to vector<2x8x1xf32>
    %c0_58 = arith.constant 0 : index
    %c0_59 = arith.constant 0 : index
    %c0_60 = arith.constant 0 : index
    %c0_61 = arith.constant 0 : index
    %153 = vector.load %arg3[%c0_58, %c0_59, %c0_60, %c0_61] : memref<5x2x8x32xbf16, #tpu.memory_space<vmem>>, vector<1x2x8x32xbf16>
    %154 = vector.shape_cast %153 : vector<1x2x8x32xbf16> to vector<2x8x32xbf16>
    %155 = arith.extf %154 : vector<2x8x32xbf16> to vector<2x8x32xf32>
    %156 = vector.broadcast %152 : vector<2x8x1xf32> to vector<2x8x32xf32>
    %157 = arith.mulf %156, %155 : vector<2x8x32xf32>
    %158 = arith.mulf %137, %148 : vector<2x8xf32>
    %159 = vector.shape_cast %158 : vector<2x8xf32> to vector<2x1x8xf32>
    %c0_62 = arith.constant 0 : index
    %c1_63 = arith.constant 1 : index
    %c0_64 = arith.constant 0 : index
    %160 = vector.load %arg8[%c0_62, %c1_63, %c0_64] : memref<2x5x8xf32, #tpu.memory_space<vmem>>, vector<2x1x8xf32>
    tpu.vector_store %arg8[%c0_62, %c1_63, %c0_64], %159 {strides = array<i32>} : memref<2x5x8xf32, #tpu.memory_space<vmem>>, vector<2x1x8xf32>,
    %161 = vector.shape_cast %158 : vector<2x8xf32> to vector<2x8x1xf32>
    %c1_65 = arith.constant 1 : index
    %c0_66 = arith.constant 0 : index
    %c0_67 = arith.constant 0 : index
    %c0_68 = arith.constant 0 : index
    %162 = vector.load %arg3[%c1_65, %c0_66, %c0_67, %c0_68] : memref<5x2x8x32xbf16, #tpu.memory_space<vmem>>, vector<1x2x8x32xbf16>
    %163 = vector.shape_cast %162 : vector<1x2x8x32xbf16> to vector<2x8x32xbf16>
    %164 = arith.extf %163 : vector<2x8x32xbf16> to vector<2x8x32xf32>
    %165 = vector.broadcast %161 : vector<2x8x1xf32> to vector<2x8x32xf32>
    %166 = arith.mulf %165, %164 : vector<2x8x32xf32>
    %167 = arith.addf %157, %166 : vector<2x8x32xf32>
    %168 = arith.mulf %139, %148 : vector<2x8xf32>
    %169 = vector.shape_cast %168 : vector<2x8xf32> to vector<2x1x8xf32>
    %c0_69 = arith.constant 0 : index
    %c2_70 = arith.constant 2 : index
    %c0_71 = arith.constant 0 : index
    %170 = vector.load %arg8[%c0_69, %c2_70, %c0_71] : memref<2x5x8xf32, #tpu.memory_space<vmem>>, vector<2x1x8xf32>
    tpu.vector_store %arg8[%c0_69, %c2_70, %c0_71], %169 {strides = array<i32>} : memref<2x5x8xf32, #tpu.memory_space<vmem>>, vector<2x1x8xf32>,
    %171 = vector.shape_cast %168 : vector<2x8xf32> to vector<2x8x1xf32>
    %c2_72 = arith.constant 2 : index
    %c0_73 = arith.constant 0 : index
    %c0_74 = arith.constant 0 : index
    %c0_75 = arith.constant 0 : index
    %172 = vector.load %arg3[%c2_72, %c0_73, %c0_74, %c0_75] : memref<5x2x8x32xbf16, #tpu.memory_space<vmem>>, vector<1x2x8x32xbf16>
    %173 = vector.shape_cast %172 : vector<1x2x8x32xbf16> to vector<2x8x32xbf16>
    %174 = arith.extf %173 : vector<2x8x32xbf16> to vector<2x8x32xf32>
    %175 = vector.broadcast %171 : vector<2x8x1xf32> to vector<2x8x32xf32>
    %176 = arith.mulf %175, %174 : vector<2x8x32xf32>
    %177 = arith.addf %167, %176 : vector<2x8x32xf32>
    %178 = arith.mulf %141, %148 : vector<2x8xf32>
    %179 = vector.shape_cast %178 : vector<2x8xf32> to vector<2x1x8xf32>
    %c0_76 = arith.constant 0 : index
    %c3_77 = arith.constant 3 : index
    %c0_78 = arith.constant 0 : index
    %180 = vector.load %arg8[%c0_76, %c3_77, %c0_78] : memref<2x5x8xf32, #tpu.memory_space<vmem>>, vector<2x1x8xf32>
    tpu.vector_store %arg8[%c0_76, %c3_77, %c0_78], %179 {strides = array<i32>} : memref<2x5x8xf32, #tpu.memory_space<vmem>>, vector<2x1x8xf32>,
    %181 = vector.shape_cast %178 : vector<2x8xf32> to vector<2x8x1xf32>
    %c3_79 = arith.constant 3 : index
    %c0_80 = arith.constant 0 : index
    %c0_81 = arith.constant 0 : index
    %c0_82 = arith.constant 0 : index
    %182 = vector.load %arg3[%c3_79, %c0_80, %c0_81, %c0_82] : memref<5x2x8x32xbf16, #tpu.memory_space<vmem>>, vector<1x2x8x32xbf16>
    %183 = vector.shape_cast %182 : vector<1x2x8x32xbf16> to vector<2x8x32xbf16>
    %184 = arith.extf %183 : vector<2x8x32xbf16> to vector<2x8x32xf32>
    %185 = vector.broadcast %181 : vector<2x8x1xf32> to vector<2x8x32xf32>
    %186 = arith.mulf %185, %184 : vector<2x8x32xf32>
    %187 = arith.addf %177, %186 : vector<2x8x32xf32>
    %188 = arith.mulf %143, %148 : vector<2x8xf32>
    %189 = vector.shape_cast %188 : vector<2x8xf32> to vector<2x1x8xf32>
    %c0_83 = arith.constant 0 : index
    %c4_84 = arith.constant 4 : index
    %c0_85 = arith.constant 0 : index
    %190 = vector.load %arg8[%c0_83, %c4_84, %c0_85] : memref<2x5x8xf32, #tpu.memory_space<vmem>>, vector<2x1x8xf32>
    tpu.vector_store %arg8[%c0_83, %c4_84, %c0_85], %189 {strides = array<i32>} : memref<2x5x8xf32, #tpu.memory_space<vmem>>, vector<2x1x8xf32>,
    %191 = vector.shape_cast %188 : vector<2x8xf32> to vector<2x8x1xf32>
    %c4_86 = arith.constant 4 : index
    %c0_87 = arith.constant 0 : index
    %c0_88 = arith.constant 0 : index
    %c0_89 = arith.constant 0 : index
    %192 = vector.load %arg3[%c4_86, %c0_87, %c0_88, %c0_89] : memref<5x2x8x32xbf16, #tpu.memory_space<vmem>>, vector<1x2x8x32xbf16>
    %193 = vector.shape_cast %192 : vector<1x2x8x32xbf16> to vector<2x8x32xbf16>
    %194 = arith.extf %193 : vector<2x8x32xbf16> to vector<2x8x32xf32>
    %195 = vector.broadcast %191 : vector<2x8x1xf32> to vector<2x8x32xf32>
    %196 = arith.mulf %195, %194 : vector<2x8x32xf32>
    %197 = arith.addf %187, %196 : vector<2x8x32xf32>
    %c0_90 = arith.constant 0 : index
    %c0_91 = arith.constant 0 : index
    %c0_92 = arith.constant 0 : index
    %198 = vector.load %arg7[%c0_90, %c0_91, %c0_92] : memref<2x8x32xf32, #tpu.memory_space<vmem>>, vector<2x8x32xf32>
    tpu.vector_store %arg7[%c0_90, %c0_91, %c0_92], %197 {strides = array<i32>} : memref<2x8x32xf32, #tpu.memory_space<vmem>>, vector<2x8x32xf32>,
    return
  }
  func.func @transform_0(%arg0: i32, %arg1: i32) -> (i32, i32, i32) {
    %c0_i32 = arith.constant 0 : i32
    %c0_i32_0 = arith.constant 0 : i32
    return %arg0, %arg1, %c0_i32 : i32, i32, i32
  }
  func.func @transform_1(%arg0: i32, %arg1: i32) -> (i32, i32, i32, i32) {
    %c0_i32 = arith.constant 0 : i32
    %c0_i32_0 = arith.constant 0 : i32
    %c0_i32_1 = arith.constant 0 : i32
    return %c0_i32, %arg0, %arg1, %c0_i32_0 : i32, i32, i32, i32
  }
  func.func @transform_2(%arg0: i32, %arg1: i32) -> (i32, i32) {
    %c0_i32 = arith.constant 0 : i32
    %c0_i32_0 = arith.constant 0 : i32
    return %arg1, %c0_i32 : i32, i32
  }
  func.func @transform_3(%arg0: i32, %arg1: i32) -> (i32, i32) {
    %c0_i32 = arith.constant 0 : i32
    %c0_i32_0 = arith.constant 0 : i32
    return %c0_i32, %arg1 : i32, i32
  }
  func.func @transform_4(%arg0: i32, %arg1: i32) -> (i32, i32, i32) {
    %c0_i32 = arith.constant 0 : i32
    %c0_i32_0 = arith.constant 0 : i32
    return %arg0, %c0_i32, %arg1 : i32, i32, i32
  }
  func.func @transform_5(%arg0: i32, %arg1: i32) -> (i32, i32, i32) {
    %c0_i32 = arith.constant 0 : i32
    %c0_i32_0 = arith.constant 0 : i32
    return %arg0, %arg1, %c0_i32 : i32, i32, i32
  }
  func.func @transform_6(%arg0: i32, %arg1: i32) -> (i32, i32, i32) {
    %c0_i32 = arith.constant 0 : i32
    %c0_i32_0 = arith.constant 0 : i32
    return %arg0, %c0_i32, %arg1 : i32, i32, i32
  }
}

</mosaic_0001>

<bundles_post_ra>
// kernel: tpu_custom_call.1
= control target key start
LH: loop header
LB: loop body
LE: loop exit
PB: predicated region body
PF: predicated region fallthrough
CT: control target
= control target key end

     0   :  { %12 = vsyncpa [#allocation3], 0  ;;  %s881_s0 = inlined_call_operand.vmem [shape: bf16[2,8,32], index: 0, kind: input, shape index: {}]   ;;  %s882_s1 = inlined_call_operand.hbm [shape: bf16[5,2,8,32], index: 1, kind: input, shape index: {}]   ;;  %s883_s2 = inlined_call_operand.vmem [shape: f32[8,32], index: 2, kind: input, shape index: {}]   ;;  %s884_s3 = inlined_call_operand.vmem [shape: f32[5,8], index: 3, kind: input, shape index: {}]   ;;  %s885_s4 = inlined_call_operand.vmem [shape: f32[2,5,8], index: 4, kind: input, shape index: {}]   ;;  %s886_s5 = inlined_call_operand.hbm [shape: f32[2,8,32], index: 5, kind: output, shape index: {0}]   ;;  %s887_s6 = inlined_call_operand.vmem [shape: f32[2,5,8], index: 6, kind: output, shape index: {1}]  }
   0x1   :  { %13 = vsyncpa [#allocation4], 0  ;;  %s666_s21 = smov [#allocation2]   ;;  %s618_s25 = scalar_lea.hbm %s882_s1, 640 }
   0x2   :  { %s21_s22 = sshll.u32 %s666_s21, 4  ;;  %p619_p0 = scmp.ne.s32.totalorder %s882_s1, %s618_s25  ;;  %s22_s22 = int_to_ptr.vmem [resolvable:$true] %s21_s22 }
   0x3   :  { %p622_p1 = scmp.lt.u32.totalorder %s618_s25, %s882_s1 }
   0x5   :  { %p624_p2 = pnand %p622_p1, %p619_p0 }
   0x7   :  { %627 = shalt.err (!%p624_p2)
}
   0x8   :  { %s628_s30 = scalar_lea.vmem %s22_s22, 640  ;;  %p633_p4 = scmp.lt.s32.totalorder %s22_s22, %s22_s22 }
   0x9   :  { %p629_p3 = scmp.ne.s32.totalorder %s22_s22, %s628_s30  ;;  %p634_p5 = scmp.lt.s32.totalorder %s628_s30, %s628_s30 }
   0xb   :  { %p635_p6 = por %p634_p5, %p633_p4 }
   0xd   :  { %p636_p7 = pnand %p635_p6, %p629_p3 }
   0xf   :  { %639 = shalt.err (!%p636_p7)
}
  0x10   :  { %s667_s7 = smov 64   ;;  %s668_s8 = smov 4  }
  0x11   :  { %27 = dma.hbm_to_vmem [thread:$0]  %s882_s1, 640, %s22_s22, [#allocation3], %s667_s7, %s667_s7, %s668_s8  }
  0x12   :  { %662 = dma.done.wait [#allocation3], 640  }
  0x13   :  { %663 = vsyncadd [#allocation3], 4294966656  ;;  %v84_v0 = vlaneseq  ;;  %v41_v4 = vld [vmem:[%s883_s2] sm:$0xff]  ;;  %v735_v11 = vld [vmem:[#allocation2 + $0x8] sm:$0xff]   ;;  %vm47_vm0 = vcmask 261120   ;;  %vm371_vm1 = vcmask 57344  }
  0x14   :  { %v728_v5 = vld [vmem:[#allocation2] sm:$0xff]   ;;  %v544_v12 = vunpack.c.h.bf16 %v735_v11  ;;  %v543_v13 = vunpack.c.l.bf16 %v735_v11  ;;  %v743_v18 = vld [vmem:[#allocation2 + $0x10] sm:$0xff]   ;;  %v44_v22 = vld [vmem:[%s885_s4 + $0x8] sm:$0x1f]  ;;  %s670_s10 = smov [#allocation5]  }
  0x15   :  { %v720_v1 = vshrl.u32 %v84_v0, 7  ;;  %v360_v2 = vand.u32 127, %v84_v0  ;;  %v534_v6 = vld [vmem:[%s881_s0] sm:$0xff]   ;;  %v539_v7 = vunpack.c.l.bf16 %v728_v5  ;;  %v540_v9 = vunpack.c.h.bf16 %v728_v5  ;;  %v761_v29 = vld [vmem:[#allocation2 + $0x18] sm:$0xff]   ;;  %s517_s11 = sshll.u32 %s670_s10, 4  ;;  %s518_s11 = int_to_ptr.vmem [resolvable:$true] %s517_s11 }
  0x16   :  { %v535_v8 = vunpack.c.l.bf16 %v534_v6  ;;  %v536_v10 = vunpack.c.h.bf16 %v534_v6  ;;  %v43_v21 = vld [vmem:[%s885_s4] sm:$0x1f]  ;;  %v548_v23 = vunpack.c.h.bf16 %v743_v18  ;;  %v547_v24 = vunpack.c.l.bf16 %v743_v18  ;;  %s640_s14 = scalar_lea.vmem %s518_s11, 256  ;;  %p645_p9 = scmp.lt.s32.totalorder %s518_s11, %s518_s11 }
  0x17   :  { %v723_v3 = vsub.s32 %v360_v2, %v720_v1  ;;  %v58_v14 = vmul.f32 %v539_v7, %v41_v4  ;;  %v59_v16 = vmul.f32 %v540_v9, %v41_v4  ;;  %v123_v27 = vmul.f32 %v544_v12, %v41_v4  ;;  %v771_v38 = vld [vmem:[#allocation2 + $0x20] sm:$0xff]   ;;  %p641_p8 = scmp.ne.s32.totalorder %s518_s11, %s640_s14  ;;  %p646_p10 = scmp.lt.s32.totalorder %s640_s14, %s640_s14 }
  0x18   :  { %v45_v15 = vmul.f32 %v535_v8, %v41_v4  ;;  %v46_v17 = vmul.f32 %v536_v10, %v41_v4  ;;  %v122_v28 = vmul.f32 %v543_v13, %v41_v4  ;;  %v66_v30 = vadd.f32 1e-20, %v43_v21  ;;  %v42_v60 = vld [vmem:[%s884_s3] sm:$0x1f] }
  0x19   :  { %v60_v19 = vsel %vm47_vm0, %v58_v14, 0.0  ;;  %v63_v25 = vsel %vm47_vm0, %v59_v16, 0.0  ;;  %v67_v31 = vadd.f32 1e-20, %v44_v22  ;;  %v169_v32 = vmul.f32 %v548_v23, %v41_v4  ;;  %p647_p11 = por %p646_p10, %p645_p9 }
  0x1a   :  { %v48_v20 = vsel %vm47_vm0, %v45_v15, 0.0  ;;  %61 = vadd.xlane.f32.xlu1 %v60_v19  ;;  %v51_v26 = vsel %vm47_vm0, %v46_v17, 0.0  ;;  %v168_v33 = vmul.f32 %v547_v24, %v41_v4  ;;  %586 = vlog2.f32 %v66_v30 }
  0x1b   :  { %49 = vadd.xlane.f32.xlu0 %v48_v20  ;;  %v127_v34 = vsel %vm47_vm0, %v123_v27, 0.0  ;;  %v124_v35 = vsel %vm47_vm0, %v122_v28, 0.0  ;;  %v552_v36 = vunpack.c.h.bf16 %v761_v29  ;;  %v551_v37 = vunpack.c.l.bf16 %v761_v29  ;;  %p648_p12 = pnand %p647_p11, %p641_p8 }
  0x1c   :  { %588 = vlog2.f32 %v67_v31  ;;  %v173_v39 = vsel %vm47_vm0, %v169_v32, 0.0  ;;  %v170_v40 = vsel %vm47_vm0, %v168_v33, 0.0  ;;  %v556_v43 = vunpack.c.h.bf16 %v771_v38 }
  0x1d   :  { %v215_v41 = vmul.f32 %v552_v36, %v41_v4  ;;  %v214_v42 = vmul.f32 %v551_v37, %v41_v4  ;;  %v555_v44 = vunpack.c.l.bf16 %v771_v38  ;;  %v134_v59 = vsub.s32 1, %v720_v1 }
  0x1e   :  { %64 = vadd.xlane.f32.xlu1 %v63_v25  ;;  %v261_v47 = vmul.f32 %v556_v43, %v41_v4  ;;  %v86_v2 = vsub.s32 0, %v720_v1  ;;  %v180_v17 = vsub.s32 2, %v720_v1  ;;  %v226_v25 = vsub.s32 3, %v720_v1 }
  0x1f   :  { %52 = vadd.xlane.f32.xlu0 %v51_v26  ;;  %v219_v45 = vsel %vm47_vm0, %v215_v41, 0.0  ;;  %v216_v46 = vsel %vm47_vm0, %v214_v42, 0.0  ;;  %v260_v48 = vmul.f32 %v555_v44, %v41_v4  ;;  %v135_v0 = vrot.slane %v42_v60, %v134_v59 }
  0x20   :  { %v265_v52 = vsel %vm47_vm0, %v261_v47, 0.0  ;;  %v87_v14 = vrot.slane %v42_v60, %v86_v2  ;;  %v181_v20 = vrot.slane %v42_v60, %v180_v17  ;;  %v227_v26 = vrot.slane %v42_v60, %v226_v25 }
  0x21   :  { %v262_v53 = vsel %vm47_vm0, %v260_v48, 0.0  ;;  %v272_v28 = vsub.s32 4, %v720_v1 }
  0x22   :  { %128 = vadd.xlane.f32.xlu1 %v127_v34  ;;  %v669_v34 = vmov 0  }
  0x23   :  { %125 = vadd.xlane.f32.xlu0 %v124_v35  ;;  %v273_v31 = vrot.slane %v42_v60, %v272_v28  ;;  %584 = vset.pattern.permute.xlu1 %v669_v34 }
  0x24   :  { %v587_v49 = vpop.eup %586  ;;  %585 = vset.pattern.permute.xlu0 %v669_v34 }
  0x25   :  { %v69_v50 = vmul.f32 0.6931472, %v587_v49 }
  0x26   :  { %174 = vadd.xlane.f32.xlu1 %v173_v39  ;;  %v589_v51 = vpop.eup %588 }
  0x27   :  { %171 = vadd.xlane.f32.xlu0 %v170_v40  ;;  %v72_v54 = vsub.f32 0.0, %v69_v50  ;;  %v71_v55 = vmul.f32 0.6931472, %v589_v51 }
  0x29   :  { %v74_v56 = vadd.f32 1e-20, %v72_v54  ;;  %v73_v57 = vsub.f32 0.0, %v71_v55 }
  0x2a   :  { %220 = vadd.xlane.f32.xlu1 %v219_v45 }
  0x2b   :  { %217 = vadd.xlane.f32.xlu0 %v216_v46  ;;  %590 = vlog2.f32 %v74_v56  ;;  %v75_v58 = vadd.f32 1e-20, %v73_v57 }
  0x2d   :  { %592 = vlog2.f32 %v75_v58 }
  0x2e   :  { %266 = vadd.xlane.f32.xlu1 %v265_v52 }
  0x2f   :  { %263 = vadd.xlane.f32.xlu0 %v262_v53 }
  0x35   :  { %v591_v61 = vpop.eup %590 }
  0x36   :  { %v77_v62 = vmul.f32 0.6931472, %v591_v61 }
  0x37   :  { %v593_v63 = vpop.eup %592 }
  0x38   :  { %v80_v4 = vsub.f32 0.0, %v77_v62  ;;  %v79_v6 = vmul.f32 0.6931472, %v593_v63 }
  0x3a   :  { %v100_v8 = vrot.slane %v80_v4, %v86_v2  ;;  %v81_v10 = vsub.f32 0.0, %v79_v6  ;;  %v146_v16 = vrot.slane %v80_v4, %v134_v59  ;;  %v192_v21 = vrot.slane %v80_v4, %v180_v17 }
  0x3b   :  { %v238_v27 = vrot.slane %v80_v4, %v226_v25  ;;  %v284_v32 = vrot.slane %v80_v4, %v272_v28 }
  0x3c   :  { %v107_v15 = vrot.slane %v81_v10, %v86_v2  ;;  %v153_v19 = vrot.slane %v81_v10, %v134_v59  ;;  %v199_v22 = vrot.slane %v81_v10, %v180_v17  ;;  %v245_v30 = vrot.slane %v81_v10, %v226_v25 }
  0x3d   :  { %v291_v33 = vrot.slane %v81_v10, %v272_v28 }
  0x3f   :  { %138 = vbcast.lane.b32.xlu1 %v135_v0, 256 }
  0x43   :  { %102 = vbcast.lane.b32.xlu1 %v100_v8, 256 }
  0x45   :  { %90 = vbcast.lane.b32.xlu0 %v87_v14, 256 }
  0x47   :  { %109 = vbcast.lane.b32.xlu1 %v107_v15, 256 }
  0x49   :  { %148 = vbcast.lane.b32.xlu0 %v146_v16, 256 }
  0x4b   :  { %155 = vbcast.lane.b32.xlu1 %v153_v19, 256 }
  0x4d   :  { %184 = vbcast.lane.b32.xlu0 %v181_v20, 256 }
  0x4f   :  { %194 = vbcast.lane.b32.xlu1 %v192_v21, 256 }
  0x51   :  { %201 = vbcast.lane.b32.xlu0 %v199_v22, 256 }
  0x53   :  { %230 = vbcast.lane.b32.xlu1 %v227_v26, 256 }
  0x55   :  { %240 = vbcast.lane.b32.xlu0 %v238_v27, 256 }
  0x57   :  { %247 = vbcast.lane.b32.xlu1 %v245_v30, 256 }
  0x59   :  { %276 = vbcast.lane.b32.xlu0 %v273_v31, 256 }
  0x5b   :  { %286 = vbcast.lane.b32.xlu1 %v284_v32, 256 }
  0x5d   :  { %293 = vbcast.lane.b32.xlu0 %v291_v33, 256 }
  0xa7   :  { %v62_v35 = vpop.xlane.xlu1 %61 }
  0xa8   :  { %v50_v39 = vpop.xlane.xlu0 %49 }
  0xa9   :  { %v82_v2 = vsub.f32 %v62_v35, %v50_v39 }
  0xab   :  { %v65_v40 = vpop.xlane.xlu1 %64 }
  0xac   :  { %v53_v41 = vpop.xlane.xlu0 %52 }
  0xad   :  { %v83_v61 = vsub.f32 %v65_v40, %v53_v41 }
  0xaf   :  { %v129_v42 = vpop.xlane.xlu1 %128 }
  0xb0   :  { %v126_v45 = vpop.xlane.xlu0 %125  ;;  %v131_v57 = vsub.f32 %v129_v42, %v53_v41 }
  0xb1   :  { %v130_v0 = vsub.f32 %v126_v45, %v50_v39 }
  0xb3   :  { %v175_v1 = vpop.xlane.xlu1 %174 }
  0xb4   :  { %v172_v46 = vpop.xlane.xlu0 %171  ;;  %v177_v8 = vsub.f32 %v175_v1, %v53_v41 }
  0xb5   :  { %v176_v14 = vsub.f32 %v172_v46, %v50_v39 }
  0xb7   :  { %v221_v47 = vpop.xlane.xlu1 %220 }
  0xb8   :  { %v218_v48 = vpop.xlane.xlu0 %217  ;;  %v223_v21 = vsub.f32 %v221_v47, %v53_v41 }
  0xb9   :  { %v222_v17 = vsub.f32 %v218_v48, %v50_v39 }
  0xbb   :  { %v267_v49 = vpop.xlane.xlu1 %266 }
  0xbc   :  { %v264_v50 = vpop.xlane.xlu0 %263  ;;  %v269_v30 = vsub.f32 %v267_v49, %v53_v41 }
  0xbf   :  { %v139_v51 = vpop.permute.xlu1 %138 }
  0xc0   :  { %v91_v52 = vpop.permute.xlu0 %90  ;;  %v142_v60 = vadd.f32 %v139_v51, %v131_v57  ;;  %v141_v15 = vadd.f32 %v139_v51, %v130_v0 }
  0xc1   :  { %v94_v62 = vadd.f32 %v91_v52, %v83_v61  ;;  %v93_v16 = vadd.f32 %v91_v52, %v82_v2  ;;  %v268_v52 = vsub.f32 %v264_v50, %v50_v39 }
  0xc3   :  { %v103_v53 = vpop.permute.xlu1 %102 }
  0xc4   :  { %v149_v54 = vpop.permute.xlu0 %148  ;;  %v113_v22 = vadd.f32 %v103_v53, %v93_v16 }
  0xc5   :  { %v159_v25 = vadd.f32 %v149_v54, %v141_v15 }
  0xc6   :  { %v115_v45 = vmul.f32 2.0, %v113_v22 }
  0xc7   :  { %v110_v55 = vpop.permute.xlu1 %109  ;;  %v161_v1 = vmul.f32 2.0, %v159_v25 }
  0xc8   :  { %v185_v56 = vpop.permute.xlu0 %184  ;;  %v114_v10 = vadd.f32 %v110_v55, %v94_v62 }
  0xc9   :  { %v188_v19 = vadd.f32 %v185_v56, %v177_v8  ;;  %v187_v26 = vadd.f32 %v185_v56, %v176_v14  ;;  %v301_v49 = vmax.f32 %v115_v45, %v161_v1 }
  0xca   :  { %v116_v31 = vmul.f32 2.0, %v114_v10 }
  0xcb   :  { %v156_v58 = vpop.permute.xlu1 %155 }
  0xcc   :  { %v202_v59 = vpop.permute.xlu0 %201  ;;  %v160_v63 = vadd.f32 %v156_v58, %v142_v60 }
  0xcd   :  { %v206_v32 = vadd.f32 %v202_v59, %v188_v19 }
  0xce   :  { %v162_v20 = vmul.f32 2.0, %v160_v63 }
  0xcf   :  { %v195_v4 = vpop.permute.xlu1 %194  ;;  %v208_v47 = vmul.f32 2.0, %v206_v32 }
  0xd0   :  { %v241_v6 = vpop.permute.xlu0 %240  ;;  %v205_v34 = vadd.f32 %v195_v4, %v187_v26  ;;  %v302_v35 = vmax.f32 %v116_v31, %v162_v20 }
  0xd2   :  { %v207_v55 = vmul.f32 2.0, %v205_v34  ;;  %v304_v56 = vmax.f32 %v302_v35, %v208_v47 }
  0xd3   :  { %v231_v27 = vpop.permute.xlu1 %230 }
  0xd4   :  { %v277_v28 = vpop.permute.xlu0 %276  ;;  %v233_v33 = vadd.f32 %v231_v27, %v222_v17  ;;  %v234_v40 = vadd.f32 %v231_v27, %v223_v21  ;;  %v303_v63 = vmax.f32 %v301_v49, %v207_v55 }
  0xd5   :  { %v280_v42 = vadd.f32 %v277_v28, %v269_v30  ;;  %v279_v57 = vadd.f32 %v277_v28, %v268_v52 }
  0xd6   :  { %v251_v46 = vadd.f32 %v241_v6, %v233_v33 }
  0xd7   :  { %v248_v48 = vpop.permute.xlu1 %247 }
  0xd8   :  { %v294_v51 = vpop.permute.xlu0 %293  ;;  %v252_v53 = vadd.f32 %v248_v48, %v234_v40  ;;  %v253_v58 = vmul.f32 2.0, %v251_v46 }
  0xd9   :  { %v298_v54 = vadd.f32 %v294_v51, %v280_v42 }
  0xda   :  { %v254_v41 = vmul.f32 2.0, %v252_v53  ;;  %v305_v4 = vmax.f32 %v303_v63, %v253_v58 }
  0xdb   :  { %v287_v59 = vpop.permute.xlu1 %286  ;;  %v300_v61 = vmul.f32 2.0, %v298_v54 }
  0xdc   :  { %v306_v60 = vmax.f32 %v304_v56, %v254_v41  ;;  %v297_v62 = vadd.f32 %v287_v59, %v279_v57 }
  0xde   :  { %v308_v0 = vmax.f32 %v306_v60, %v300_v61  ;;  %v299_v2 = vmul.f32 2.0, %v297_v62 }
  0xe0   :  { %v310_v6 = vsub.f32 %v116_v31, %v308_v0  ;;  %v316_v8 = vsub.f32 %v162_v20, %v308_v0  ;;  %v322_v39 = vsub.f32 %v208_v47, %v308_v0  ;;  %v328_v50 = vsub.f32 %v254_v41, %v308_v0 }
  0xe1   :  { %v307_v10 = vmax.f32 %v305_v4, %v299_v2  ;;  %v334_v17 = vsub.f32 %v300_v61, %v308_v0 }
  0xe2   :  { %v313_v14 = vmul.f32 1.442695, %v310_v6  ;;  %v319_v15 = vmul.f32 1.442695, %v316_v8  ;;  %v325_v16 = vmul.f32 1.442695, %v322_v39 }
  0xe3   :  { %v309_v19 = vsub.f32 %v115_v45, %v307_v10  ;;  %v315_v21 = vsub.f32 %v161_v1, %v307_v10  ;;  %v331_v22 = vmul.f32 1.442695, %v328_v50  ;;  %v321_v25 = vsub.f32 %v207_v55, %v307_v10 }
  0xe4   :  { %594 = vpow2.f32 %v313_v14  ;;  %v327_v28 = vsub.f32 %v253_v58, %v307_v10  ;;  %v337_v30 = vmul.f32 1.442695, %v334_v17  ;;  %v333_v31 = vsub.f32 %v299_v2, %v307_v10 }
  0xe5   :  { %596 = vpow2.f32 %v319_v15  ;;  %v311_v26 = vmul.f32 1.442695, %v309_v19  ;;  %v317_v27 = vmul.f32 1.442695, %v315_v21  ;;  %v323_v20 = vmul.f32 1.442695, %v321_v25 }
  0xe6   :  { %598 = vpow2.f32 %v325_v16  ;;  %v329_v32 = vmul.f32 1.442695, %v327_v28  ;;  %v335_v33 = vmul.f32 1.442695, %v333_v31 }
  0xe7   :  { %600 = vpow2.f32 %v331_v22 }
  0xe8   :  { %602 = vpow2.f32 %v311_v26 }
  0xe9   :  { %604 = vpow2.f32 %v317_v27 }
  0xea   :  { %606 = vpow2.f32 %v337_v30 }
  0xeb   :  { %608 = vpow2.f32 %v323_v20 }
  0xec   :  { %610 = vpow2.f32 %v329_v32 }
  0xed   :  { %612 = vpow2.f32 %v335_v33 }
  0xee   :  { %v595_v34 = vpop.eup %594 }
  0xef   :  { %v597_v35 = vpop.eup %596 }
  0xf0   :  { %v340_v40 = vadd.f32 %v597_v35, %v595_v34  ;;  %v599_v42 = vpop.eup %598 }
  0xf1   :  { %v601_v45 = vpop.eup %600 }
  0xf2   :  { %v342_v1 = vadd.f32 %v599_v42, %v340_v40  ;;  %v603_v46 = vpop.eup %602 }
  0xf3   :  { %v605_v48 = vpop.eup %604 }
  0xf4   :  { %v344_v51 = vadd.f32 %v601_v45, %v342_v1  ;;  %v607_v52 = vpop.eup %606  ;;  %v339_v47 = vadd.f32 %v605_v48, %v603_v46 }
  0xf5   :  { %v609_v53 = vpop.eup %608 }
  0xf6   :  { %v346_v54 = vadd.f32 %v607_v52, %v344_v51  ;;  %v341_v55 = vadd.f32 %v609_v53, %v339_v47  ;;  %v611_v56 = vpop.eup %610 }
  0xf7   :  { %v613_v41 = vpop.eup %612 }
  0xf8   :  { %614 = vrcp.f32 %v346_v54  ;;  %v343_v57 = vadd.f32 %v611_v56, %v341_v55 }
  0xfa   :  { %v345_v49 = vadd.f32 %v613_v41, %v343_v57 }
  0xfc   :  { %616 = vrcp.f32 %v345_v49 }
 0x102   :  { %v615_v58 = vpop.eup %614 }
 0x103   :  { %v350_v59 = vmul.f32 %v615_v58, %v595_v34  ;;  %v383_v2 = vmul.f32 %v615_v58, %v597_v35  ;;  %v415_v6 = vmul.f32 %v615_v58, %v599_v42  ;;  %v447_v8 = vmul.f32 %v615_v58, %v601_v45 }
 0x104   :  { %v479_v39 = vmul.f32 %v615_v58, %v607_v52 }
 0x105   :  { %357 = vperm.xlu0 %585, %v350_v59  }
 0x106   :  { %v617_v60 = vpop.eup %616 }
 0x107   :  { %v349_v61 = vmul.f32 %v617_v60, %v603_v46  ;;  %v414_v62 = vmul.f32 %v617_v60, %v609_v53  ;;  %v382_v63 = vmul.f32 %v617_v60, %v605_v48  ;;  %v446_v0 = vmul.f32 %v617_v60, %v611_v56 }
 0x108   :  { %v478_v4 = vmul.f32 %v617_v60, %v613_v41 }
 0x109   :  { %354 = vperm.xlu1 %584, %v349_v61   ;;  %419 = vperm.xlu0 %585, %v414_v62  }
 0x10d   :  { %387 = vperm.xlu1 %584, %v382_v63   ;;  %451 = vperm.xlu0 %585, %v446_v0  }
 0x111   :  { %390 = vperm.xlu1 %584, %v383_v2   ;;  %483 = vperm.xlu0 %585, %v478_v4  }
 0x115   :  { %422 = vperm.xlu1 %584, %v415_v6  }
 0x119   :  { %454 = vperm.xlu1 %584, %v447_v8  }
 0x11d   :  { %486 = vperm.xlu1 %584, %v479_v39  }
 0x184   :  { %v358_v50 = vpop.permute.xlu0 %357 }
 0x185   :  { %v368_v10 = vrot.slane %v358_v50, %v723_v3 }
 0x187   :  { %373 = vst.msk [vmem:[%s887_s6 + $0x8] sm:$0x1] %vm371_vm1, %v368_v10 }
 0x188   :  { %v355_v14 = vpop.permute.xlu1 %354  ;;  %v420_v15 = vpop.permute.xlu0 %419 }
 0x189   :  { %v364_v16 = vrot.slane %v355_v14, %v723_v3  ;;  %v427_v17 = vrot.slane %v420_v15, %v723_v3  ;;  %v380_v22 = vmul.f32 %v539_v7, %v355_v14  ;;  %v442_v28 = vmul.f32 %v547_v24, %v420_v15 }
 0x18b   :  { %372 = vst.msk [vmem:[%s887_s6] sm:$0x1] %vm371_vm1, %v364_v16  ;;  %434 = vst.msk [vmem:[%s887_s6 + $0x2] sm:$0x1] %vm371_vm1, %v427_v17 }
 0x18c   :  { %v388_v19 = vpop.permute.xlu1 %387  ;;  %v452_v21 = vpop.permute.xlu0 %451 }
 0x18d   :  { %v395_v25 = vrot.slane %v388_v19, %v723_v3  ;;  %v410_v26 = vmul.f32 %v543_v13, %v388_v19  ;;  %v459_v27 = vrot.slane %v452_v21, %v723_v3  ;;  %v474_v13 = vmul.f32 %v551_v37, %v452_v21 }
 0x18f   :  { %402 = vst.msk [vmem:[%s887_s6 + $0x1] sm:$0x1] %vm371_vm1, %v395_v25  ;;  %v412_v30 = vadd.f32 %v410_v26, %v380_v22  ;;  %466 = vst.msk [vmem:[%s887_s6 + $0x3] sm:$0x1] %vm371_vm1, %v459_v27 }
 0x190   :  { %v391_v7 = vpop.permute.xlu1 %390  ;;  %v484_v20 = vpop.permute.xlu0 %483 }
 0x191   :  { %v444_v31 = vadd.f32 %v442_v28, %v412_v30  ;;  %v399_v32 = vrot.slane %v391_v7, %v723_v3  ;;  %v491_v24 = vrot.slane %v484_v20, %v723_v3  ;;  %v506_v33 = vmul.f32 %v555_v44, %v484_v20 }
 0x192   :  { %v411_v37 = vmul.f32 %v544_v12, %v391_v7  ;;  %v381_v44 = vmul.f32 %v540_v9, %v358_v50 }
 0x193   :  { %v476_v34 = vadd.f32 %v474_v13, %v444_v31  ;;  %403 = vst.msk [vmem:[%s887_s6 + $0x9] sm:$0x1] %vm371_vm1, %v399_v32  ;;  %498 = vst.msk [vmem:[%s887_s6 + $0x4] sm:$0x1] %vm371_vm1, %v491_v24 }
 0x194   :  { %v423_v35 = vpop.permute.xlu1 %422  ;;  %v413_v46 = vadd.f32 %v411_v37, %v381_v44 }
 0x195   :  { %v508_v40 = vadd.f32 %v506_v33, %v476_v34  ;;  %v431_v42 = vrot.slane %v423_v35, %v723_v3  ;;  %v443_v45 = vmul.f32 %v548_v23, %v423_v35 }
 0x197   :  { %510 = vst.msk [vmem:[#allocation5] sm:$0xff] %vm47_vm0, %v508_v40  ;;  %v445_v48 = vadd.f32 %v443_v45, %v413_v46 }
 0x198   :  { %435 = vst.msk [vmem:[%s887_s6 + $0xa] sm:$0x1] %vm371_vm1, %v431_v42  ;;  %v455_v1 = vpop.permute.xlu1 %454 }
 0x199   :  { %v463_v11 = vrot.slane %v455_v1, %v723_v3  ;;  %v475_v12 = vmul.f32 %v552_v36, %v455_v1 }
 0x19b   :  { %467 = vst.msk [vmem:[%s887_s6 + $0xb] sm:$0x1] %vm371_vm1, %v463_v11  ;;  %v477_v9 = vadd.f32 %v475_v12, %v445_v48 }
 0x19c   :  { %v487_v5 = vpop.permute.xlu1 %486 }
 0x19d   :  { %v495_v18 = vrot.slane %v487_v5, %v723_v3  ;;  %v507_v23 = vmul.f32 %v556_v43, %v487_v5 }
 0x19f   :  { %499 = vst.msk [vmem:[%s887_s6 + $0xc] sm:$0x1] %vm371_vm1, %v495_v18  ;;  %v509_v29 = vadd.f32 %v507_v23, %v477_v9 }
 0x1a1   :  { %511 = vst.msk [vmem:[#allocation5 + $0x8] sm:$0xff] %vm47_vm0, %v509_v29 }
 0x1a2   :  { %651 = shalt.err (!%p648_p12)
}
 0x1a3   :  { %s652_s2 = scalar_lea.hbm %s886_s5, 256 }
 0x1a4   :  { %p653_p13 = scmp.ne.s32.totalorder %s886_s5, %s652_s2  ;;  %p656_p0 = scmp.lt.u32.totalorder %s652_s2, %s886_s5 }
 0x1a6   :  { %p658_p1 = pnand %p656_p0, %p653_p13 }
 0x1a8   :  { %661 = shalt.err (!%p658_p1)
}
 0x1a9   :  { %s671_s3 = smov 128   ;;  %s672_s17 = smov 8  }
 0x1aa   :  { %523 = dma.vmem_to_hbm [thread:$0]  %s518_s11, 256, %s886_s5, [#allocation4], %s671_s3, %s671_s3, %s672_s17  }
 0x1ab   :  { %664 = dma.done.wait [#allocation4], 256  }
 0x1ac   :  { %665 = vsyncadd [#allocation4], 4294967040 }
 0x1ad   :  { %531 = vsyncpa [#allocation3], 1 }
 0x1ae   :  { %532 = vsyncpa [#allocation4], 1 }

</bundles_post_ra>
